<compile_context>
chip_gen: v5e
topology: v5e:2x2
jax: 0.10.0
libtpu: 0.0.40
codegen_flags: <defaults>
</compile_context>

<pallas_src>
import jax
import jax.numpy as jnp
from jax.experimental import pallas as pl
from jax.experimental.pallas import tpu as pltpu

_LANE = 128
_SUBLANE = 8
_VMEM_BLOCK_BUDGET = 32 * 1024 * 1024   # double-buffered (in + out) block budget
_VMEM_LIMIT_BYTES = 40 * 1024 * 1024    # scoped VMEM limit (headroom for resident weight)


def _round_up(x, m):
    return (x + m - 1) // m * m


def _choose_block_rows(n_rows, in_lanes, in_itemsize, out_lanes, out_itemsize):
    """Rows per block so that double-buffered, LANE-PADDED in+out blocks fit the budget."""
    in_row_bytes = _round_up(in_lanes, _LANE) * in_itemsize
    out_row_bytes = _round_up(out_lanes, _LANE) * out_itemsize
    per_row = 2 * (in_row_bytes + out_row_bytes)          # x2 for double buffering
    tb = _VMEM_BLOCK_BUDGET // max(1, per_row)
    tb = max(_SUBLANE, (tb // _SUBLANE) * _SUBLANE)
    needed = _round_up(n_rows, _SUBLANE)
    return int(min(tb, needed))


def _packed_matmul_kernel(x_ref, m_ref, b_ref, o_ref):
    # x_ref: (TBp, 128) VMEM (lane-dense packed rows)
    # m_ref: (128, R)  VMEM (resident segmented weight matrix)
    # b_ref: (1,)      SMEM scalar bias
    # o_ref: (TBp, R)  VMEM
    acc = jnp.dot(x_ref[...], m_ref[...], preferred_element_type=jnp.float32)
    o_ref[...] = (acc + b_ref[0]).astype(o_ref.dtype)


def _rowwise_kernel(x_ref, w_ref, b_ref, o_ref):
    # Fallback: x_ref (TB, W), w_ref (1, W) resident, b_ref (1,) SMEM, o_ref (TB, 1)
    x = x_ref[...].astype(jnp.float32)
    w = w_ref[...].astype(jnp.float32)
    acc = jnp.sum(x * w, axis=-1, keepdims=True)          # VPU mul + XLU lane reduce
    o_ref[...] = (acc + b_ref[0]).astype(o_ref.dtype)


def linear_model_forward(x, weight, bias):
    """Pallas equivalent of Linear_Model.forward.

    x:      (B, W) float32 or bfloat16
    weight: (1, W)  (PyTorch nn.Linear layout, NOT transposed)
    bias:   (1,)
    returns (B, 1) float32
    """
    B, W = x.shape
    bias_f32 = bias.astype(jnp.float32).reshape((1,))
    itemsize = jnp.dtype(x.dtype).itemsize

    packed_ok = (0 < W < _LANE) and (_LANE % W == 0) and (B % (_LANE // W) == 0) and B > 0

    compiler_params = pltpu.CompilerParams(
        dimension_semantics=(pltpu.PARALLEL,),
        vmem_limit_bytes=_VMEM_LIMIT_BYTES,
    )

    if packed_ok:
        R = _LANE // W
        Bp = B // R
        # Free row-major reshape: packed row p = logical rows [p*R, (p+1)*R).
        x_p = x.reshape(Bp, _LANE)
        # Segmented weight matrix: M[g*W + w, g] = weight[w], 0 elsewhere.
        w_vec = weight.reshape(W).astype(jnp.float32)
        m = (jnp.eye(R, dtype=jnp.float32)[:, None, :] * w_vec[None, :, None])
        m = m.reshape(_LANE, R).astype(x.dtype)

        tb = _choose_block_rows(Bp, _LANE, itemsize, R, 4)
        grid = (pl.cdiv(Bp, tb),)

        out = pl.pallas_call(
            _packed_matmul_kernel,
            out_shape=jax.ShapeDtypeStruct((Bp, R), jnp.float32),
            grid=grid,
            in_specs=[
                pl.BlockSpec((tb, _LANE), lambda i: (i, 0)),            # packed x tiles
                pl.BlockSpec((_LANE, R), lambda i: (0, 0)),             # M resident
                pl.BlockSpec(memory_space=pltpu.MemorySpace.SMEM),      # bias scalar
            ],
            out_specs=pl.BlockSpec((tb, R), lambda i: (i, 0)),
            compiler_params=compiler_params,
        )(x_p, m, bias_f32)
        # Free reshape back to the logical (B, 1) layout (row-major order matches).
        return out.reshape(B, 1)

    # Row-wise fallback (arbitrary W, ragged B). No padding: Pallas masks the
    # partial last block (garbage tail rows are never written).
    tb = _choose_block_rows(B, W, itemsize, 1, 4)
    grid = (pl.cdiv(B, tb),)

    out = pl.pallas_call(
        _rowwise_kernel,
        out_shape=jax.ShapeDtypeStruct((B, 1), jnp.float32),
        grid=grid,
        in_specs=[
            pl.BlockSpec((tb, W), lambda i: (i, 0)),                    # x tiles
            pl.BlockSpec((1, W), lambda i: (0, 0)),                     # weight resident
            pl.BlockSpec(memory_space=pltpu.MemorySpace.SMEM),          # bias scalar
        ],
        out_specs=pl.BlockSpec((tb, 1), lambda i: (i, 0)),
        compiler_params=compiler_params,
    )(x, weight.astype(jnp.float32).reshape(1, W), bias_f32)
    return out


if __name__ == "__main__":
    # Module: Linear(width, 1) with weight initialized to all-ones, bias zeros.
    width = 32
    batch = 8

    key = jax.random.PRNGKey(0)
    k1, k2, k3, k4 = jax.random.split(key, 4)
    x = jax.random.normal(k1, (batch, width), dtype=jnp.float32)

    # Deterministic parameters exactly as the PyTorch __init__ produces them:
    # nn.init.ones_(weight), nn.init.zeros_(bias)
    weight = jnp.ones((1, width), dtype=jnp.float32)
    bias = jnp.zeros((1,), dtype=jnp.float32)

    out = jax.block_until_ready(linear_model_forward(x, weight, bias))
    ref = jnp.sum(x, axis=-1, keepdims=True)      # all-ones weight, zero bias
    assert out.shape == (batch, 1)
    assert jnp.allclose(out, ref, atol=1e-4, rtol=1e-4)

    # Packed path with general weight/bias values (batch divisible by 128//width).
    batch2 = 256
    x2 = jax.random.normal(k2, (batch2, width), dtype=jnp.float32)
    w2 = jax.random.normal(k3, (1, width), dtype=jnp.float32)
    b2 = jnp.full((1,), 0.5, dtype=jnp.float32)
    out2 = jax.block_until_ready(linear_model_forward(x2, w2, b2))
    ref2 = x2 @ w2.T + b2
    assert out2.shape == (batch2, 1)
    assert jnp.allclose(out2, ref2, atol=1e-4, rtol=1e-4)

    # Row-wise fallback path: ragged batch (exercises partial-block masking, no pad).
    batch3 = 13
    x3 = jax.random.normal(k4, (batch3, width), dtype=jnp.float32)
    out3 = jax.block_until_ready(linear_model_forward(x3, w2, b2))
    ref3 = x3 @ w2.T + b2
    assert out3.shape == (batch3, 1)
    assert jnp.allclose(out3, ref3, atol=1e-4, rtol=1e-4)

    print("KERNEL_OK")
</pallas_src>

<mosaic_0001>
module attributes {stable_mosaic.version = 11 : i64} {
  func.func @_packed_matmul_kernel(%arg0: i32, %arg1: memref<8x128xf32, #tpu.memory_space<vmem>>, %arg2: memref<128x4xf32, #tpu.memory_space<vmem>>, %arg3: memref<1xf32, #tpu.memory_space<smem>>, %arg4: memref<8x4xf32, #tpu.memory_space<vmem>>) attributes {dimension_semantics = [#tpu.dimension_semantics<parallel>], iteration_bounds = array<i64: 1>, scalar_prefetch = 0 : i64, scratch_operands = 0 : i64, tpu.core_type = #tpu.core_type<tc>, window_params = [{transform_indices = @transform_0, window_bounds = array<i64: 8, 128>}, {pipeline_mode = #tpu.pipeline_mode<synchronous>, transform_indices = @transform_1, window_bounds = array<i64: 128, 4>}, {transform_indices = @transform_2, window_bounds = array<i64: 1>}, {transform_indices = @transform_3, window_bounds = array<i64: 8, 4>}]} {
    %c0 = arith.constant 0 : index
    %c0_0 = arith.constant 0 : index
    %0 = vector.load %arg1[%c0, %c0_0] : memref<8x128xf32, #tpu.memory_space<vmem>>, vector<8x128xf32>
    %c0_1 = arith.constant 0 : index
    %c0_2 = arith.constant 0 : index
    %1 = vector.load %arg2[%c0_1, %c0_2] : memref<128x4xf32, #tpu.memory_space<vmem>>, vector<128x4xf32>
    %cst = arith.constant dense<0.000000e+00> : vector<8x4xf32>
    %2 = tpu.matmul %0, %1, %cst {dimension_numbers = #tpu.dot_dimension_numbers<[1], [0], [0], [1], [0, 0, 1, 1], [], []>} : vector<8x128xf32>, vector<128x4xf32>, vector<8x4xf32> -> vector<8x4xf32>
    %c0_3 = arith.constant 0 : index
    %3 = memref.load %arg3[%c0_3] : memref<1xf32, #tpu.memory_space<smem>>
    %4 = vector.broadcast %3 : f32 to vector<8x4xf32>
    %5 = arith.addf %2, %4 : vector<8x4xf32>
    %c0_4 = arith.constant 0 : index
    %c0_5 = arith.constant 0 : index
    %6 = vector.load %arg4[%c0_4, %c0_5] : memref<8x4xf32, #tpu.memory_space<vmem>>, vector<8x4xf32>
    tpu.vector_store %arg4[%c0_4, %c0_5], %5 {strides = array<i32>} : memref<8x4xf32, #tpu.memory_space<vmem>>, vector<8x4xf32>,
    return
  }
  func.func @transform_0(%arg0: i32) -> (i32, i32) {
    %c0_i32 = arith.constant 0 : i32
    %c0_i32_0 = arith.constant 0 : i32
    return %arg0, %c0_i32 : i32, i32
  }
  func.func @transform_1(%arg0: i32) -> (i32, i32) {
    %c0_i32 = arith.constant 0 : i32
    %c0_i32_0 = arith.constant 0 : i32
    %c0_i32_1 = arith.constant 0 : i32
    return %c0_i32, %c0_i32_0 : i32, i32
  }
  func.func @transform_2(%arg0: i32) -> i32 {
    %c0_i32 = arith.constant 0 : i32
    %c0_i32_0 = arith.constant 0 : i32
    return %c0_i32 : i32
  }
  func.func @transform_3(%arg0: i32) -> (i32, i32) {
    %c0_i32 = arith.constant 0 : i32
    %c0_i32_0 = arith.constant 0 : i32
    return %arg0, %c0_i32 : i32, i32
  }
}

</mosaic_0001>

<bundles_post_ra>
// kernel: tpu_custom_call.1
= control target key start
LH: loop header
LB: loop body
LE: loop exit
PB: predicated region body
PF: predicated region fallthrough
CT: control target
= control target key end

     0   :  { %9 = vsyncpa [#allocation4], 0  ;;  %vm55_vm0 = vcmask 31744   ;;  %s184_s0 = inlined_call_operand.vmem [shape: f32[2,128], index: 0, kind: input, shape index: {}]   ;;  %s185_s1 = inlined_call_operand.vmem [shape: f32[128,4], index: 1, kind: input, shape index: {}]   ;;  %s186_s2 = inlined_call_operand.<no memory space> [shape: f32[1], index: 2, kind: input, shape index: {}]   ;;  %s187_s3 = inlined_call_operand.hbm [shape: f32[2,4], index: 3, kind: output, shape index: {}]  }
   0x1   :  { %v32_v0 = vld [vmem:[%s185_s1 + $0x78] sm:$0xff]  ;;  %v31_v1 = vld [vmem:[%s185_s1 + $0x70] sm:$0xff]  ;;  %v30_v2 = vld [vmem:[%s185_s1 + $0x68] sm:$0xff]  ;;  %v34_v17 = vstv %s186_s2 }
   0x2   :  { %35 = vmatpush.msra.mxu0 %v32_v0  ;;  %v29_v3 = vld [vmem:[%s185_s1 + $0x60] sm:$0xff]  ;;  %v28_v4 = vld [vmem:[%s185_s1 + $0x58] sm:$0xff]  ;;  %v27_v5 = vld [vmem:[%s185_s1 + $0x50] sm:$0xff] }
   0x3   :  { %v26_v6 = vld [vmem:[%s185_s1 + $0x48] sm:$0xff]  ;;  %v25_v7 = vld [vmem:[%s185_s1 + $0x40] sm:$0xff]  ;;  %v24_v8 = vld [vmem:[%s185_s1 + $0x38] sm:$0xff] }
   0x4   :  { %36 = vmatpush.msra.mxu0 %v31_v1  ;;  %v23_v9 = vld [vmem:[%s185_s1 + $0x30] sm:$0xff]  ;;  %v22_v10 = vld [vmem:[%s185_s1 + $0x28] sm:$0xff]  ;;  %v21_v11 = vld [vmem:[%s185_s1 + $0x20] sm:$0xff] }
   0x5   :  { %v20_v12 = vld [vmem:[%s185_s1 + $0x18] sm:$0xff]  ;;  %v19_v13 = vld [vmem:[%s185_s1 + $0x10] sm:$0xff]  ;;  %v18_v14 = vld [vmem:[%s185_s1 + $0x8] sm:$0xff] }
   0x6   :  { %37 = vmatpush.msra.mxu0 %v30_v2  ;;  %v17_v15 = vld [vmem:[%s185_s1] sm:$0xff] }
   0x7   :  { %v16_v16 = vld [vmem:[%s184_s0] sm:$0xff] }
   0x8   :  { %38 = vmatpush.msra.mxu0 %v29_v3 }
   0xa   :  { %39 = vmatpush.msra.mxu0 %v28_v4 }
   0xc   :  { %40 = vmatpush.msra.mxu0 %v27_v5 }
   0xe   :  { %41 = vmatpush.msra.mxu0 %v26_v6 }
  0x10   :  { %42 = vmatpush.msra.mxu0 %v25_v7 }
  0x12   :  { %43 = vmatpush.msra.mxu0 %v24_v8 }
  0x14   :  { %44 = vmatpush.msra.mxu0 %v23_v9 }
  0x16   :  { %45 = vmatpush.msra.mxu0 %v22_v10 }
  0x18   :  { %46 = vmatpush.msra.mxu0 %v21_v11 }
  0x1a   :  { %47 = vmatpush.msra.mxu0 %v20_v12 }
  0x1c   :  { %48 = vmatpush.msra.mxu0 %v19_v13 }
  0x1e   :  { %49 = vmatpush.msra.mxu0 %v18_v14 }
  0x20   :  { %50 = vmatpush.msra.mxu0 %v17_v15 }
  0x21   :  { %51 = vmatmul.f32.vlgmr.msra.gmra.mxu0 %v16_v16 }
  0x9e   :  { %v52_v18 = vpop.f32.mrf.mxu0 }
  0x9f   :  { %v53_v19 = vadd.f32 %v52_v18, %v34_v17 }
  0xa1   :  { %56 = vst.msk [vmem:[#allocation3] sm:$0xff] %vm55_vm0, %v53_v19 }
  0xa2   :  { %60 = vsyncadd [#allocation4], 96  ;;  %s63_s1 = sshll.u32 %s187_s3, 4  ;;  %s104_s23 = smov [#allocation3]   ;;  %s64_s1 = int_to_ptr.hbm [resolvable:$true] %s63_s1 }
  0xa3   :  { %s61_s24 = sshll.u32 %s104_s23, 4  ;;  %s105_s0 = smov 32   ;;  %s62_s24 = int_to_ptr.vmem [resolvable:$true] %s61_s24 }
  0xa4   :  { %s106_s25 = smov 2  }
  0xa5   :  { %69 = dma.vmem_to_hbm [thread:$0]  %s62_s24, 32, %s64_s1, [#allocation4], %s105_s0, %s105_s0, %s106_s25  }
  0xa6   :  { %102 = dma.done.wait [#allocation4], 128  }
  0xa7   :  { %103 = vsyncadd [#allocation4], 4294967168 }
  0xa8   :  { %74 = vsyncpa [#allocation4], 1 }

</bundles_post_ra>
